<compile_context>
chip_gen: v7x
topology: tpu7x:2x2x1
jax: 0.10.0
libtpu: 0.0.40
codegen_flags: <defaults>
</compile_context>

<pallas_src>
import functools

import jax
import jax.numpy as jnp
from jax.experimental import pallas as pl
from jax.experimental.pallas import tpu as pltpu


NEG_SLOPE = 0.01  # PyTorch LeakyReLU default negative_slope
DIMS = [(1, 256), (256, 512), (512, 512), (512, 256), (256, 1)]


def _leaky_relu(v):
    return jnp.where(v > 0, v, NEG_SLOPE * v)


def _round_up(n, m):
    return ((n + m - 1) // m) * m


def mlp_kernel(x_ref,
               w1_ref, b1_ref,
               w2_ref, b2_ref,
               w3_ref, b3_ref,
               w4_ref, b4_ref,
               w5_ref, b5_ref,
               o_ref):
    x = x_ref[...]                                                   # (TM, 1) f32

    # Layer 1: K=1 -> outer product on the VPU (no MXU pass).
    h = _leaky_relu(x * w1_ref[...] + b1_ref[...])                   # (TM, 256)

    # Layers 2-4: bf16 MXU matmuls, f32 accumulation, f32 elementwise.
    h = _leaky_relu(
        jnp.dot(h.astype(jnp.bfloat16), w2_ref[...],
                preferred_element_type=jnp.float32) + b2_ref[...])   # (TM, 512)
    h = _leaky_relu(
        jnp.dot(h.astype(jnp.bfloat16), w3_ref[...],
                preferred_element_type=jnp.float32) + b3_ref[...])   # (TM, 512)
    h = _leaky_relu(
        jnp.dot(h.astype(jnp.bfloat16), w4_ref[...],
                preferred_element_type=jnp.float32) + b4_ref[...])   # (TM, 256)

    # Layer 5: N=1 -> lane reduction (XLU) instead of a padded MXU pass.
    y = jnp.sum(h * w5_ref[...], axis=-1, keepdims=True) + b5_ref[...]  # (TM, 1)
    o_ref[...] = y.astype(o_ref.dtype)


@functools.partial(jax.jit, static_argnames=("tm",))
def simple_mlp_forward(x, params, *, tm=256):
    """x: (B, 1) float32. params: flat tuple (w1, b1, ..., w5, b5)."""
    B = x.shape[0]
    TM = min(tm, _round_up(max(B, 1), 8))      # small batches: one small tile
    B_pad = _round_up(B, TM)
    if B_pad != B:
        x = jnp.pad(x, ((0, B_pad - B), (0, 0)))

    grid = (B_pad // TM,)

    # x / out: batch-tiled. Weights/biases: full array, constant block index
    # (stay resident in VMEM across all grid steps).
    in_specs = [pl.BlockSpec((TM, 1), lambda i: (i, 0))]
    for p in params:
        in_specs.append(pl.BlockSpec(p.shape, lambda i: (0, 0)))
    out_specs = pl.BlockSpec((TM, 1), lambda i: (i, 0))

    flops = 2 * B_pad * sum(fi * fo for fi, fo in DIMS)
    weight_bytes = sum(int(p.size) * p.dtype.itemsize for p in params)
    bytes_accessed = weight_bytes + B_pad * 2 * 4   # x in + y out (f32)

    out = pl.pallas_call(
        mlp_kernel,
        out_shape=jax.ShapeDtypeStruct((B_pad, 1), jnp.float32),
        grid=grid,
        in_specs=in_specs,
        out_specs=out_specs,
        compiler_params=pltpu.CompilerParams(
            dimension_semantics=("parallel",)),
        cost_estimate=pl.CostEstimate(
            flops=flops, transcendentals=0, bytes_accessed=bytes_accessed),
    )(x, *params)

    return out[:B] if B_pad != B else out


def init_params(key):
    """Matches nn.Linear default init U(-1/sqrt(fan_in), 1/sqrt(fan_in)).

    Storage layout (kernel-friendly):
      w1: (1, 256)  f32   (row of the K=1 layer)
      w2: (256,512) bf16, w3: (512,512) bf16, w4: (512,256) bf16
      w5: (1, 256)  f32   (transposed column of the N=1 layer)
      b*: (1, out)  f32
    """
    params = []
    keys = jax.random.split(key, len(DIMS))
    for idx, (k, (fan_in, fan_out)) in enumerate(zip(keys, DIMS)):
        kw, kb = jax.random.split(k)
        bound = 1.0 / jnp.sqrt(fan_in)
        w = jax.random.uniform(kw, (fan_in, fan_out), jnp.float32, -bound, bound)
        b = jax.random.uniform(kb, (1, fan_out), jnp.float32, -bound, bound)
        if idx == 0:
            pass                                   # (1, 256) f32, used on VPU
        elif idx == len(DIMS) - 1:
            w = w.T                                # (1, 256) f32, used on VPU
        else:
            w = w.astype(jnp.bfloat16)             # MXU layers: bf16 weights
        params += [w, b]
    return tuple(params)


def reference_forward(x, params):
    """Pure-JAX reference following the exact same numerics as the kernel."""
    w1, b1, w2, b2, w3, b3, w4, b4, w5, b5 = params
    h = _leaky_relu(x * w1 + b1)
    h = _leaky_relu(jnp.dot(h.astype(jnp.bfloat16), w2,
                            preferred_element_type=jnp.float32) + b2)
    h = _leaky_relu(jnp.dot(h.astype(jnp.bfloat16), w3,
                            preferred_element_type=jnp.float32) + b3)
    h = _leaky_relu(jnp.dot(h.astype(jnp.bfloat16), w4,
                            preferred_element_type=jnp.float32) + b4)
    return jnp.sum(h * w5, axis=-1, keepdims=True) + b5


if __name__ == "__main__":
    key = jax.random.PRNGKey(0)
    kparams, kx = jax.random.split(key)
    params = init_params(kparams)

    B = 8
    x = jax.random.normal(kx, (B, 1), jnp.float32)

    out = simple_mlp_forward(x, params)
    out = jax.block_until_ready(out)

    ref = reference_forward(x, params)
    assert out.shape == (B, 1), out.shape
    assert jnp.allclose(out, ref, atol=1e-3, rtol=1e-3), (out, ref)
    print("KERNEL_OK")
</pallas_src>

<mosaic_0001>
module attributes {stable_mosaic.version = 11 : i64} {
  func.func @mlp_kernel(%arg0: i32, %arg1: memref<8x1xf32, #tpu.memory_space<vmem>>, %arg2: memref<1x256xf32, #tpu.memory_space<vmem>>, %arg3: memref<1x256xf32, #tpu.memory_space<vmem>>, %arg4: memref<256x512xbf16, #tpu.memory_space<vmem>>, %arg5: memref<1x512xf32, #tpu.memory_space<vmem>>, %arg6: memref<512x512xbf16, #tpu.memory_space<vmem>>, %arg7: memref<1x512xf32, #tpu.memory_space<vmem>>, %arg8: memref<512x256xbf16, #tpu.memory_space<vmem>>, %arg9: memref<1x256xf32, #tpu.memory_space<vmem>>, %arg10: memref<1x256xf32, #tpu.memory_space<vmem>>, %arg11: memref<1x1xf32, #tpu.memory_space<vmem>>, %arg12: memref<8x1xf32, #tpu.memory_space<vmem>>) attributes {dimension_semantics = [#tpu.dimension_semantics<parallel>], iteration_bounds = array<i64: 1>, scalar_prefetch = 0 : i64, scratch_operands = 0 : i64, tpu.core_type = #tpu.core_type<tc>, window_params = [{transform_indices = @transform_0, window_bounds = array<i64: 8, 1>}, {pipeline_mode = #tpu.pipeline_mode<synchronous>, transform_indices = @transform_1, window_bounds = array<i64: 1, 256>}, {pipeline_mode = #tpu.pipeline_mode<synchronous>, transform_indices = @transform_2, window_bounds = array<i64: 1, 256>}, {pipeline_mode = #tpu.pipeline_mode<synchronous>, transform_indices = @transform_3, window_bounds = array<i64: 256, 512>}, {pipeline_mode = #tpu.pipeline_mode<synchronous>, transform_indices = @transform_4, window_bounds = array<i64: 1, 512>}, {pipeline_mode = #tpu.pipeline_mode<synchronous>, transform_indices = @transform_5, window_bounds = array<i64: 512, 512>}, {pipeline_mode = #tpu.pipeline_mode<synchronous>, transform_indices = @transform_6, window_bounds = array<i64: 1, 512>}, {pipeline_mode = #tpu.pipeline_mode<synchronous>, transform_indices = @transform_7, window_bounds = array<i64: 512, 256>}, {pipeline_mode = #tpu.pipeline_mode<synchronous>, transform_indices = @transform_8, window_bounds = array<i64: 1, 256>}, {pipeline_mode = #tpu.pipeline_mode<synchronous>, transform_indices = @transform_9, window_bounds = array<i64: 1, 256>}, {pipeline_mode = #tpu.pipeline_mode<synchronous>, transform_indices = @transform_10, window_bounds = array<i64: 1, 1>}, {transform_indices = @transform_11, window_bounds = array<i64: 8, 1>}]} {
    %c0 = arith.constant 0 : index
    %c0_0 = arith.constant 0 : index
    %0 = vector.load %arg1[%c0, %c0_0] : memref<8x1xf32, #tpu.memory_space<vmem>>, vector<8x1xf32>
    %c0_1 = arith.constant 0 : index
    %c0_2 = arith.constant 0 : index
    %1 = vector.load %arg2[%c0_1, %c0_2] : memref<1x256xf32, #tpu.memory_space<vmem>>, vector<1x256xf32>
    %2 = vector.broadcast %0 : vector<8x1xf32> to vector<8x256xf32>
    %3 = vector.broadcast %1 : vector<1x256xf32> to vector<8x256xf32>
    %4 = arith.mulf %2, %3 : vector<8x256xf32>
    %c0_3 = arith.constant 0 : index
    %c0_4 = arith.constant 0 : index
    %5 = vector.load %arg3[%c0_3, %c0_4] : memref<1x256xf32, #tpu.memory_space<vmem>>, vector<1x256xf32>
    %6 = vector.broadcast %5 : vector<1x256xf32> to vector<8x256xf32>
    %7 = arith.addf %4, %6 : vector<8x256xf32>
    %cst = arith.constant 0.000000e+00 : f32
    %8 = vector.broadcast %cst : f32 to vector<8x256xf32>
    %9 = arith.cmpf ogt, %7, %8 : vector<8x256xf32>
    %cst_5 = arith.constant 0.00999999977 : f32
    %10 = vector.broadcast %cst_5 : f32 to vector<8x256xf32>
    %11 = arith.mulf %10, %7 : vector<8x256xf32>
    %12 = arith.select %9, %7, %11 : vector<8x256xi1>, vector<8x256xf32>
    %13 = arith.truncf %12 : vector<8x256xf32> to vector<8x256xbf16>
    %c0_6 = arith.constant 0 : index
    %c0_7 = arith.constant 0 : index
    %14 = vector.load %arg4[%c0_6, %c0_7] : memref<256x512xbf16, #tpu.memory_space<vmem>>, vector<256x512xbf16>
    %cst_8 = arith.constant dense<0.000000e+00> : vector<8x512xf32>
    %15 = tpu.matmul %13, %14, %cst_8 {dimension_numbers = #tpu.dot_dimension_numbers<[1], [0], [0], [1], [0, 0, 1, 1], [], []>} : vector<8x256xbf16>, vector<256x512xbf16>, vector<8x512xf32> -> vector<8x512xf32>
    %c0_9 = arith.constant 0 : index
    %c0_10 = arith.constant 0 : index
    %16 = vector.load %arg5[%c0_9, %c0_10] : memref<1x512xf32, #tpu.memory_space<vmem>>, vector<1x512xf32>
    %17 = vector.broadcast %16 : vector<1x512xf32> to vector<8x512xf32>
    %18 = arith.addf %15, %17 : vector<8x512xf32>
    %cst_11 = arith.constant 0.000000e+00 : f32
    %19 = vector.broadcast %cst_11 : f32 to vector<8x512xf32>
    %20 = arith.cmpf ogt, %18, %19 : vector<8x512xf32>
    %cst_12 = arith.constant 0.00999999977 : f32
    %21 = vector.broadcast %cst_12 : f32 to vector<8x512xf32>
    %22 = arith.mulf %21, %18 : vector<8x512xf32>
    %23 = arith.select %20, %18, %22 : vector<8x512xi1>, vector<8x512xf32>
    %24 = arith.truncf %23 : vector<8x512xf32> to vector<8x512xbf16>
    %c0_13 = arith.constant 0 : index
    %c0_14 = arith.constant 0 : index
    %25 = vector.load %arg6[%c0_13, %c0_14] : memref<512x512xbf16, #tpu.memory_space<vmem>>, vector<512x512xbf16>
    %cst_15 = arith.constant dense<0.000000e+00> : vector<8x512xf32>
    %26 = tpu.matmul %24, %25, %cst_15 {dimension_numbers = #tpu.dot_dimension_numbers<[1], [0], [0], [1], [0, 0, 1, 1], [], []>} : vector<8x512xbf16>, vector<512x512xbf16>, vector<8x512xf32> -> vector<8x512xf32>
    %c0_16 = arith.constant 0 : index
    %c0_17 = arith.constant 0 : index
    %27 = vector.load %arg7[%c0_16, %c0_17] : memref<1x512xf32, #tpu.memory_space<vmem>>, vector<1x512xf32>
    %28 = vector.broadcast %27 : vector<1x512xf32> to vector<8x512xf32>
    %29 = arith.addf %26, %28 : vector<8x512xf32>
    %cst_18 = arith.constant 0.000000e+00 : f32
    %30 = vector.broadcast %cst_18 : f32 to vector<8x512xf32>
    %31 = arith.cmpf ogt, %29, %30 : vector<8x512xf32>
    %cst_19 = arith.constant 0.00999999977 : f32
    %32 = vector.broadcast %cst_19 : f32 to vector<8x512xf32>
    %33 = arith.mulf %32, %29 : vector<8x512xf32>
    %34 = arith.select %31, %29, %33 : vector<8x512xi1>, vector<8x512xf32>
    %35 = arith.truncf %34 : vector<8x512xf32> to vector<8x512xbf16>
    %c0_20 = arith.constant 0 : index
    %c0_21 = arith.constant 0 : index
    %36 = vector.load %arg8[%c0_20, %c0_21] : memref<512x256xbf16, #tpu.memory_space<vmem>>, vector<512x256xbf16>
    %cst_22 = arith.constant dense<0.000000e+00> : vector<8x256xf32>
    %37 = tpu.matmul %35, %36, %cst_22 {dimension_numbers = #tpu.dot_dimension_numbers<[1], [0], [0], [1], [0, 0, 1, 1], [], []>} : vector<8x512xbf16>, vector<512x256xbf16>, vector<8x256xf32> -> vector<8x256xf32>
    %c0_23 = arith.constant 0 : index
    %c0_24 = arith.constant 0 : index
    %38 = vector.load %arg9[%c0_23, %c0_24] : memref<1x256xf32, #tpu.memory_space<vmem>>, vector<1x256xf32>
    %39 = vector.broadcast %38 : vector<1x256xf32> to vector<8x256xf32>
    %40 = arith.addf %37, %39 : vector<8x256xf32>
    %cst_25 = arith.constant 0.000000e+00 : f32
    %41 = vector.broadcast %cst_25 : f32 to vector<8x256xf32>
    %42 = arith.cmpf ogt, %40, %41 : vector<8x256xf32>
    %cst_26 = arith.constant 0.00999999977 : f32
    %43 = vector.broadcast %cst_26 : f32 to vector<8x256xf32>
    %44 = arith.mulf %43, %40 : vector<8x256xf32>
    %45 = arith.select %42, %40, %44 : vector<8x256xi1>, vector<8x256xf32>
    %c0_27 = arith.constant 0 : index
    %c0_28 = arith.constant 0 : index
    %46 = vector.load %arg10[%c0_27, %c0_28] : memref<1x256xf32, #tpu.memory_space<vmem>>, vector<1x256xf32>
    %47 = vector.broadcast %46 : vector<1x256xf32> to vector<8x256xf32>
    %48 = arith.mulf %45, %47 : vector<8x256xf32>
    %cst_29 = arith.constant dense<0.000000e+00> : vector<8xf32>
    %49 = vector.multi_reduction <add>, %48, %cst_29 [1] : vector<8x256xf32> to vector<8xf32>
    %50 = vector.shape_cast %49 : vector<8xf32> to vector<8x1xf32>
    %c0_30 = arith.constant 0 : index
    %c0_31 = arith.constant 0 : index
    %51 = vector.load %arg11[%c0_30, %c0_31] : memref<1x1xf32, #tpu.memory_space<vmem>>, vector<1x1xf32>
    %52 = vector.broadcast %51 : vector<1x1xf32> to vector<8x1xf32>
    %53 = arith.addf %50, %52 : vector<8x1xf32>
    %c0_32 = arith.constant 0 : index
    %c0_33 = arith.constant 0 : index
    %54 = vector.load %arg12[%c0_32, %c0_33] : memref<8x1xf32, #tpu.memory_space<vmem>>, vector<8x1xf32>
    tpu.vector_store %arg12[%c0_32, %c0_33], %53 {strides = array<i32>} : memref<8x1xf32, #tpu.memory_space<vmem>>, vector<8x1xf32>,
    return
  }
  func.func @transform_0(%arg0: i32) -> (i32, i32) {
    %c0_i32 = arith.constant 0 : i32
    %c0_i32_0 = arith.constant 0 : i32
    return %arg0, %c0_i32 : i32, i32
  }
  func.func @transform_1(%arg0: i32) -> (i32, i32) {
    %c0_i32 = arith.constant 0 : i32
    %c0_i32_0 = arith.constant 0 : i32
    %c0_i32_1 = arith.constant 0 : i32
    return %c0_i32, %c0_i32_0 : i32, i32
  }
  func.func @transform_2(%arg0: i32) -> (i32, i32) {
    %c0_i32 = arith.constant 0 : i32
    %c0_i32_0 = arith.constant 0 : i32
    %c0_i32_1 = arith.constant 0 : i32
    return %c0_i32, %c0_i32_0 : i32, i32
  }
  func.func @transform_3(%arg0: i32) -> (i32, i32) {
    %c0_i32 = arith.constant 0 : i32
    %c0_i32_0 = arith.constant 0 : i32
    %c0_i32_1 = arith.constant 0 : i32
    return %c0_i32, %c0_i32_0 : i32, i32
  }
  func.func @transform_4(%arg0: i32) -> (i32, i32) {
    %c0_i32 = arith.constant 0 : i32
    %c0_i32_0 = arith.constant 0 : i32
    %c0_i32_1 = arith.constant 0 : i32
    return %c0_i32, %c0_i32_0 : i32, i32
  }
  func.func @transform_5(%arg0: i32) -> (i32, i32) {
    %c0_i32 = arith.constant 0 : i32
    %c0_i32_0 = arith.constant 0 : i32
    %c0_i32_1 = arith.constant 0 : i32
    return %c0_i32, %c0_i32_0 : i32, i32
  }
  func.func @transform_6(%arg0: i32) -> (i32, i32) {
    %c0_i32 = arith.constant 0 : i32
    %c0_i32_0 = arith.constant 0 : i32
    %c0_i32_1 = arith.constant 0 : i32
    return %c0_i32, %c0_i32_0 : i32, i32
  }
  func.func @transform_7(%arg0: i32) -> (i32, i32) {
    %c0_i32 = arith.constant 0 : i32
    %c0_i32_0 = arith.constant 0 : i32
    %c0_i32_1 = arith.constant 0 : i32
    return %c0_i32, %c0_i32_0 : i32, i32
  }
  func.func @transform_8(%arg0: i32) -> (i32, i32) {
    %c0_i32 = arith.constant 0 : i32
    %c0_i32_0 = arith.constant 0 : i32
    %c0_i32_1 = arith.constant 0 : i32
    return %c0_i32, %c0_i32_0 : i32, i32
  }
  func.func @transform_9(%arg0: i32) -> (i32, i32) {
    %c0_i32 = arith.constant 0 : i32
    %c0_i32_0 = arith.constant 0 : i32
    %c0_i32_1 = arith.constant 0 : i32
    return %c0_i32, %c0_i32_0 : i32, i32
  }
  func.func @transform_10(%arg0: i32) -> (i32, i32) {
    %c0_i32 = arith.constant 0 : i32
    %c0_i32_0 = arith.constant 0 : i32
    %c0_i32_1 = arith.constant 0 : i32
    return %c0_i32, %c0_i32_0 : i32, i32
  }
  func.func @transform_11(%arg0: i32) -> (i32, i32) {
    %c0_i32 = arith.constant 0 : i32
    %c0_i32_0 = arith.constant 0 : i32
    return %arg0, %c0_i32 : i32, i32
  }
}

</mosaic_0001>

<bundles_post_ra>
// kernel: simple_mlp_forward.1
= control target key start
LH: loop header
LB: loop body
LE: loop exit
PB: predicated region body
PF: predicated region fallthrough
CT: control target
= control target key end

     0   :  { %s3039_s0 = inlined_call_operand.vmem [shape: f32[8,1], index: 0, kind: input, shape index: {}]   ;;  %s3040_s1 = inlined_call_operand.vmem [shape: f32[1,256], index: 1, kind: input, shape index: {}]   ;;  %s3041_s2 = inlined_call_operand.vmem [shape: f32[1,256], index: 2, kind: input, shape index: {}]   ;;  %s3042_s3 = inlined_call_operand.hbm [shape: bf16[256,512], index: 3, kind: input, shape index: {}]   ;;  %s3043_s4 = inlined_call_operand.vmem [shape: f32[1,512], index: 4, kind: input, shape index: {}]   ;;  %s3044_s5 = inlined_call_operand.hbm [shape: bf16[512,512], index: 5, kind: input, shape index: {}]   ;;  %s3045_s6 = inlined_call_operand.vmem [shape: f32[1,512], index: 6, kind: input, shape index: {}]   ;;  %s3046_s7 = inlined_call_operand.hbm [shape: bf16[512,256], index: 7, kind: input, shape index: {}]   ;;  %s3047_s8 = inlined_call_operand.vmem [shape: f32[1,256], index: 8, kind: input, shape index: {}]   ;;  %s3048_s9 = inlined_call_operand.vmem [shape: f32[1,256], index: 9, kind: input, shape index: {}]   ;;  %s3049_s10 = inlined_call_operand.<no memory space> [shape: f32[1,1], index: 10, kind: input, shape index: {}]   ;;  %s3050_s11 = inlined_call_operand.vmem [shape: f32[8,1], index: 11, kind: output, shape index: {}]  }
   0x1   :  { %v16_v0 = vstv %s3049_s10 }
   0x2   :  { %17 = vst [vmem:[#allocation2] sm:$0x1] %v16_v0 }
   0x3   :  { %18 = vsyncpa [#allocation4], 0 }
   0x4   :  { %19 = vsyncpa [#allocation6], 0  ;;  %s2852_s19 = smov [#allocation5]   ;;  %s2853_s21 = smov [#allocation3]  }
   0x5   :  { %s45_s20 = sshll.u32 %s2852_s19, 4  ;;  %s31_s22 = sshll.u32 %s2853_s21, 4  ;;  %s46_s20 = int_to_ptr.vmem [resolvable:$true] %s45_s20  ;;  %s2923_s22 = int_to_ptr.vmem [resolvable:$true] %s31_s22 }
   0x6   :  { %s2782_s25 = scalar_lea.hbm %s3044_s5, 16384 }
   0x7   :  { %p2783_p0 = scmp.ne.s32.totalorder %s3044_s5, %s2782_s25  ;;  %p2786_p1 = scmp.lt.u32.totalorder %s2782_s25, %s3044_s5 }
   0x9   :  { %p2788_p2 = pnand %p2786_p1, %p2783_p0 }
   0xb   :  { %2791 = shalt.err (!%p2788_p2)
}
   0xc   :  { %s2792_s29 = scalar_lea.vmem %s46_s20, 16384  ;;  %p2797_p4 = scmp.lt.s32.totalorder %s46_s20, %s46_s20 }
   0xd   :  { %p2793_p3 = scmp.ne.s32.totalorder %s46_s20, %s2792_s29  ;;  %p2798_p5 = scmp.lt.s32.totalorder %s2792_s29, %s2792_s29 }
   0xf   :  { %p2799_p6 = por %p2798_p5, %p2797_p4 }
  0x11   :  { %p2800_p7 = pnand %p2799_p6, %p2793_p3 }
  0x13   :  { %2803 = shalt.err (!%p2800_p7)
}
  0x14   :  { %s2854_s30 = smov 256   ;;  %s2855_s12 = smov 16  }
  0x15   :  { %51 = dma.hbm_to_vmem [thread:$0]  %s3044_s5, 16384, %s46_s20, [#allocation6], %s2854_s30, %s2854_s30, %s2855_s12  }
  0x16   :  { %s2804_s17 = scalar_lea.hbm %s3042_s3, 8192 }
  0x17   :  { %p2805_p8 = scmp.ne.s32.totalorder %s3042_s3, %s2804_s17  ;;  %p2808_p9 = scmp.lt.u32.totalorder %s2804_s17, %s3042_s3 }
  0x19   :  { %p2810_p10 = pnand %p2808_p9, %p2805_p8 }
  0x1b   :  { %2813 = shalt.err (!%p2810_p10)
}
  0x1c   :  { %s2814_s24 = scalar_lea.vmem %s2923_s22, 8192  ;;  %p2819_p12 = scmp.lt.s32.totalorder %s2923_s22, %s2923_s22 }
  0x1d   :  { %p2815_p11 = scmp.ne.s32.totalorder %s2923_s22, %s2814_s24  ;;  %p2820_p13 = scmp.lt.s32.totalorder %s2814_s24, %s2814_s24 }
  0x1f   :  { %p2821_p0 = por %p2820_p13, %p2819_p12 }
  0x21   :  { %p2822_p1 = pnand %p2821_p0, %p2815_p11 }
  0x23   :  { %2825 = shalt.err (!%p2822_p1)
}
  0x24   :  { %37 = dma.hbm_to_vmem [thread:$0]  %s3042_s3, 8192, %s2923_s22, [#allocation4], %s2854_s30, %s2854_s30, %s2855_s12  }
  0x25   :  { %s2856_s25 = smov [#allocation7]   ;;  %s2826_s10 = scalar_lea.hbm %s3046_s7, 8192 }
  0x26   :  { %s59_s26 = sshll.u32 %s2856_s25, 4  ;;  %p2827_p2 = scmp.ne.s32.totalorder %s3046_s7, %s2826_s10  ;;  %s60_s26 = int_to_ptr.vmem [resolvable:$true] %s59_s26 }
  0x27   :  { %p2830_p3 = scmp.lt.u32.totalorder %s2826_s10, %s3046_s7 }
  0x29   :  { %p2832_p4 = pnand %p2830_p3, %p2827_p2 }
  0x2b   :  { %2835 = shalt.err (!%p2832_p4)
}
  0x2c   :  { %s2836_s16 = scalar_lea.vmem %s60_s26, 8192  ;;  %p2841_p6 = scmp.lt.s32.totalorder %s60_s26, %s60_s26 }
  0x2d   :  { %p2837_p5 = scmp.ne.s32.totalorder %s60_s26, %s2836_s16  ;;  %p2842_p7 = scmp.lt.s32.totalorder %s2836_s16, %s2836_s16 }
  0x2f   :  { %p2843_p8 = por %p2842_p7, %p2841_p6 }
  0x31   :  { %p2844_p9 = pnand %p2843_p8, %p2837_p5 }
  0x33   :  { %2847 = shalt.err (!%p2844_p9)
}
  0x34   :  { %s2857_s3 = smov 128   ;;  %s2858_s22 = smov 8  }
  0x35   :  { %65 = dma.hbm_to_vmem [thread:$0]  %s3046_s7, 8192, %s60_s26, [#allocation6], %s2857_s3, %s2857_s3, %s2858_s22  }
  0x36   :  { %2848 = dma.done.wait [#allocation4], 8192  }
  0x37   :  { %2849 = vsyncadd [#allocation4], 4294959104 }
  0x38   :  { %2850 = dma.done.wait [#allocation6], 24576  }
  0x39   :  { %2851 = vsyncadd [#allocation6], 4294942720  ;;  %v2859_v1 = vmov 0   ;;  %v81_v2 = vld [vmem:[%s3039_s0] sm:$0xff]  ;;  %v89_v57 = vlaneseq  ;;  %vm2106_vm12 = vcmask 7168  }
  0x3a   :  { %2397 = vset.pattern.permute.xlu0 %v2859_v1  ;;  %v2398_v3 = vld [vmem:[#allocation3 + $0x4] ss:$16 sps:$4 sm:$0xff]   ;;  %v2400_v4 = vld [vmem:[#allocation3] ss:$16 sps:$4 sm:$0xff]   ;;  %v2448_v35 = vld [vmem:[#allocation3 + $0xc] ss:$16 sps:$4 sm:$0xff]  }
  0x3b   :  { %85 = vperm.xlu0 %2397, %v81_v2   ;;  %v2401_v5 = vld [vmem:[#allocation3 + $0x24] ss:$16 sps:$4 sm:$0xff]   ;;  %529 = vmatprep.subr.bf16.mxu1 %v2398_v3  ;;  %v2403_v6 = vld [vmem:[#allocation3 + $0x20] ss:$16 sps:$4 sm:$0xff]   ;;  %v2969_v60 = vshrl.u32 %v89_v57, 7 }
  0x3c   :  { %530 = vmatpush1.bf16.msra.mxu1 %v2400_v4  ;;  %v2404_v7 = vld [vmem:[#allocation3 + $0x44] ss:$16 sps:$4 sm:$0xff]   ;;  %v2406_v8 = vld [vmem:[#allocation3 + $0x40] ss:$16 sps:$4 sm:$0xff]   ;;  %v2508_v57 = vld [vmem:[#allocation5 + $0x48] ss:$16 sps:$4 sm:$0xff]  }
  0x3d   :  { %531 = vmatprep.subr.bf16.mxu1 %v2401_v5  ;;  %v2407_v9 = vld [vmem:[#allocation3 + $0x64] ss:$16 sps:$4 sm:$0xff]   ;;  %v2409_v10 = vld [vmem:[#allocation3 + $0x60] ss:$16 sps:$4 sm:$0xff]   ;;  %v2975_v0 = vsub.s32 0, %v2969_v60  ;;  %v2978_v1 = vsub.s32 1, %v2969_v60 }
  0x3e   :  { %v2410_v11 = vld [vmem:[#allocation3 + $0x84] ss:$16 sps:$4 sm:$0xff]   ;;  %v2412_v12 = vld [vmem:[#allocation3 + $0x80] ss:$16 sps:$4 sm:$0xff]  }
  0x3f   :  { %v2413_v13 = vld [vmem:[#allocation3 + $0xa4] ss:$16 sps:$4 sm:$0xff]   ;;  %v2415_v14 = vld [vmem:[#allocation3 + $0xa0] ss:$16 sps:$4 sm:$0xff]  }
  0x40   :  { %532 = vmatpush1.bf16.msra.mxu1 %v2403_v6  ;;  %v2416_v15 = vld [vmem:[#allocation3 + $0xc4] ss:$16 sps:$4 sm:$0xff]   ;;  %v2418_v16 = vld [vmem:[#allocation3 + $0xc0] ss:$16 sps:$4 sm:$0xff]  }
  0x41   :  { %533 = vmatprep.subr.bf16.mxu1 %v2404_v7  ;;  %v2419_v17 = vld [vmem:[#allocation3 + $0xe4] ss:$16 sps:$4 sm:$0xff]   ;;  %v2421_v18 = vld [vmem:[#allocation3 + $0xe0] ss:$16 sps:$4 sm:$0xff]  }
  0x42   :  { %v2422_v19 = vld [vmem:[#allocation3 + $0x104] ss:$16 sps:$4 sm:$0xff]   ;;  %v2424_v20 = vld [vmem:[#allocation3 + $0x100] ss:$16 sps:$4 sm:$0xff]  }
  0x43   :  { %v2425_v21 = vld [vmem:[#allocation3 + $0x124] ss:$16 sps:$4 sm:$0xff]   ;;  %v2427_v22 = vld [vmem:[#allocation3 + $0x120] ss:$16 sps:$4 sm:$0xff]  }
  0x44   :  { %534 = vmatpush1.bf16.msra.mxu1 %v2406_v8  ;;  %v2428_v23 = vld [vmem:[#allocation3 + $0x144] ss:$16 sps:$4 sm:$0xff]   ;;  %v2430_v24 = vld [vmem:[#allocation3 + $0x140] ss:$16 sps:$4 sm:$0xff]  }
  0x45   :  { %535 = vmatprep.subr.bf16.mxu1 %v2407_v9  ;;  %v2431_v25 = vld [vmem:[#allocation3 + $0x164] ss:$16 sps:$4 sm:$0xff]   ;;  %v2433_v26 = vld [vmem:[#allocation3 + $0x160] ss:$16 sps:$4 sm:$0xff]  }
  0x46   :  { %v2434_v27 = vld [vmem:[#allocation3 + $0x184] ss:$16 sps:$4 sm:$0xff]   ;;  %v2436_v28 = vld [vmem:[#allocation3 + $0x180] ss:$16 sps:$4 sm:$0xff]  }
  0x47   :  { %v2437_v29 = vld [vmem:[#allocation3 + $0x1a4] ss:$16 sps:$4 sm:$0xff]   ;;  %v2439_v30 = vld [vmem:[#allocation3 + $0x1a0] ss:$16 sps:$4 sm:$0xff]  }
  0x48   :  { %536 = vmatpush1.bf16.msra.mxu1 %v2409_v10  ;;  %v2440_v31 = vld [vmem:[#allocation3 + $0x1c4] ss:$16 sps:$4 sm:$0xff]   ;;  %v2442_v32 = vld [vmem:[#allocation3 + $0x1c0] ss:$16 sps:$4 sm:$0xff]  }
  0x49   :  { %537 = vmatprep.subr.bf16.mxu1 %v2410_v11  ;;  %v2443_v33 = vld [vmem:[#allocation3 + $0x1e4] ss:$16 sps:$4 sm:$0xff]   ;;  %v2445_v34 = vld [vmem:[#allocation3 + $0x1e0] ss:$16 sps:$4 sm:$0xff]  }
  0x4a   :  { %v2494_v36 = vld [vmem:[#allocation5 + $0x4] ss:$16 sps:$4 sm:$0xff]   ;;  %v2499_v37 = vld [vmem:[#allocation5] ss:$16 sps:$4 sm:$0xff]  }
  0x4b   :  { %v2500_v38 = vld [vmem:[#allocation5 + $0x24] ss:$16 sps:$4 sm:$0xff]   ;;  %1417 = vmatprep.subr.bf16.mxu0 %v2494_v36  ;;  %v2505_v39 = vld [vmem:[#allocation5 + $0x20] ss:$16 sps:$4 sm:$0xff]   ;;  %v2472_v36 = vld [vmem:[#allocation3 + $0x10c] ss:$16 sps:$4 sm:$0xff]  }
  0x4c   :  { %538 = vmatpush1.bf16.msra.mxu1 %v2412_v12  ;;  %1418 = vmatpush1.bf16.msra.mxu0 %v2499_v37  ;;  %v2506_v40 = vld [vmem:[#allocation5 + $0x44] ss:$16 sps:$4 sm:$0xff]   ;;  %v2511_v41 = vld [vmem:[#allocation5 + $0x40] ss:$16 sps:$4 sm:$0xff]   ;;  %v2470_v37 = vld [vmem:[#allocation3 + $0x108] ss:$16 sps:$4 sm:$0xff]  }
  0x4d   :  { %539 = vmatprep.subr.bf16.mxu1 %v2413_v13  ;;  %1419 = vmatprep.subr.bf16.mxu0 %v2500_v38  ;;  %v2512_v42 = vld [vmem:[#allocation5 + $0x64] ss:$16 sps:$4 sm:$0xff]   ;;  %v2517_v43 = vld [vmem:[#allocation5 + $0x60] ss:$16 sps:$4 sm:$0xff]   ;;  %v2475_v38 = vld [vmem:[#allocation3 + $0x12c] ss:$16 sps:$4 sm:$0xff]  }
  0x4e   :  { %v2518_v44 = vld [vmem:[#allocation5 + $0x84] ss:$16 sps:$4 sm:$0xff]   ;;  %v2523_v45 = vld [vmem:[#allocation5 + $0x80] ss:$16 sps:$4 sm:$0xff]  }
  0x4f   :  { %v2524_v46 = vld [vmem:[#allocation5 + $0xa4] ss:$16 sps:$4 sm:$0xff]   ;;  %v2529_v47 = vld [vmem:[#allocation5 + $0xa0] ss:$16 sps:$4 sm:$0xff]  }
  0x50   :  { %540 = vmatpush1.bf16.msra.mxu1 %v2415_v14  ;;  %1420 = vmatpush1.bf16.msra.mxu0 %v2505_v39  ;;  %v2530_v48 = vld [vmem:[#allocation5 + $0xc4] ss:$16 sps:$4 sm:$0xff]   ;;  %v2535_v49 = vld [vmem:[#allocation5 + $0xc0] ss:$16 sps:$4 sm:$0xff]   ;;  %v2473_v39 = vld [vmem:[#allocation3 + $0x128] ss:$16 sps:$4 sm:$0xff]  }
  0x51   :  { %541 = vmatprep.subr.bf16.mxu1 %v2416_v15  ;;  %1421 = vmatprep.subr.bf16.mxu0 %v2506_v40  ;;  %v2536_v50 = vld [vmem:[#allocation5 + $0xe4] ss:$16 sps:$4 sm:$0xff]   ;;  %v2541_v51 = vld [vmem:[#allocation5 + $0xe0] ss:$16 sps:$4 sm:$0xff]   ;;  %v2478_v40 = vld [vmem:[#allocation3 + $0x14c] ss:$16 sps:$4 sm:$0xff]  }
  0x52   :  { %v2542_v52 = vld [vmem:[#allocation5 + $0x104] ss:$16 sps:$4 sm:$0xff]   ;;  %v2547_v53 = vld [vmem:[#allocation5 + $0x100] ss:$16 sps:$4 sm:$0xff]  }
  0x53   :  { %v2548_v54 = vld [vmem:[#allocation5 + $0x124] ss:$16 sps:$4 sm:$0xff]   ;;  %v2553_v55 = vld [vmem:[#allocation5 + $0x120] ss:$16 sps:$4 sm:$0xff]  }
  0x54   :  { %542 = vmatpush1.bf16.msra.mxu1 %v2418_v16  ;;  %1422 = vmatpush1.bf16.msra.mxu0 %v2511_v41  ;;  %v2554_v56 = vld [vmem:[#allocation5 + $0x144] ss:$16 sps:$4 sm:$0xff]   ;;  %v2559_v58 = vld [vmem:[#allocation5 + $0x140] ss:$16 sps:$4 sm:$0xff]   ;;  %v2476_v41 = vld [vmem:[#allocation3 + $0x148] ss:$16 sps:$4 sm:$0xff]  }
  0x55   :  { %543 = vmatprep.subr.bf16.mxu1 %v2419_v17  ;;  %1423 = vmatprep.subr.bf16.mxu0 %v2512_v42  ;;  %v2560_v59 = vld [vmem:[#allocation5 + $0x164] ss:$16 sps:$4 sm:$0xff]   ;;  %v2565_v61 = vld [vmem:[#allocation5 + $0x160] ss:$16 sps:$4 sm:$0xff]   ;;  %v2481_v42 = vld [vmem:[#allocation3 + $0x16c] ss:$16 sps:$4 sm:$0xff]  }
  0x56   :  { %v82_v62 = vld [vmem:[%s3040_s1] sm:$0x3]  ;;  %v2566_v63 = vld [vmem:[#allocation5 + $0x184] ss:$16 sps:$4 sm:$0xff]  }
  0x57   :  { %v2571_v2 = vld [vmem:[#allocation5 + $0x180] ss:$16 sps:$4 sm:$0xff]   ;;  %v2572_v4 = vld [vmem:[#allocation5 + $0x1a4] ss:$16 sps:$4 sm:$0xff]   ;;  %v92_v5 = vrot.slane %v82_v62, %v2975_v0  ;;  %v96_v6 = vrot.slane %v82_v62, %v2978_v1  ;;  %v2520_v62 = vld [vmem:[#allocation5 + $0x88] ss:$16 sps:$4 sm:$0xff]  }
  0x58   :  { %544 = vmatpush1.bf16.msra.mxu1 %v2421_v18  ;;  %1424 = vmatpush1.bf16.msra.mxu0 %v2517_v43  ;;  %v101_v3 = vld [vmem:[%s3041_s2] sm:$0x3]  ;;  %v2479_v43 = vld [vmem:[#allocation3 + $0x168] ss:$16 sps:$4 sm:$0xff]  }
  0x59   :  { %545 = vmatprep.subr.bf16.mxu1 %v2422_v19  ;;  %1425 = vmatprep.subr.bf16.mxu0 %v2518_v44  ;;  %v2577_v7 = vld [vmem:[#allocation5 + $0x1a0] ss:$16 sps:$4 sm:$0xff]   ;;  %v106_v8 = vrot.slane %v101_v3, %v2975_v0  ;;  %v110_v9 = vrot.slane %v101_v3, %v2978_v1  ;;  %v2484_v44 = vld [vmem:[#allocation3 + $0x18c] ss:$16 sps:$4 sm:$0xff]  }
  0x5a   :  { %v2534_v3 = vld [vmem:[#allocation5 + $0xcc] ss:$16 sps:$4 sm:$0xff]  }
  0x5c   :  { %546 = vmatpush1.bf16.msra.mxu1 %v2424_v20  ;;  %1426 = vmatpush1.bf16.msra.mxu0 %v2523_v45  ;;  %v2446_v20 = vld [vmem:[#allocation3 + $0x8] ss:$16 sps:$4 sm:$0xff]  }
  0x5d   :  { %547 = vmatprep.subr.bf16.mxu1 %v2425_v21  ;;  %1427 = vmatprep.subr.bf16.mxu0 %v2524_v46  ;;  %v2482_v45 = vld [vmem:[#allocation3 + $0x188] ss:$16 sps:$4 sm:$0xff]   ;;  %v2487_v46 = vld [vmem:[#allocation3 + $0x1ac] ss:$16 sps:$4 sm:$0xff]  }
  0x60   :  { %548 = vmatpush1.bf16.msra.mxu1 %v2427_v22  ;;  %1428 = vmatpush1.bf16.msra.mxu0 %v2529_v47  ;;  %v2451_v22 = vld [vmem:[#allocation3 + $0x2c] ss:$16 sps:$4 sm:$0xff]   ;;  %v2485_v47 = vld [vmem:[#allocation3 + $0x1a8] ss:$16 sps:$4 sm:$0xff]  }
  0x61   :  { %549 = vmatprep.subr.bf16.mxu1 %v2428_v23  ;;  %1429 = vmatprep.subr.bf16.mxu0 %v2530_v48  ;;  %v2449_v23 = vld [vmem:[#allocation3 + $0x28] ss:$16 sps:$4 sm:$0xff]   ;;  %v2490_v48 = vld [vmem:[#allocation3 + $0x1cc] ss:$16 sps:$4 sm:$0xff]  }
  0x64   :  { %550 = vmatpush1.bf16.msra.mxu1 %v2430_v24  ;;  %1430 = vmatpush1.bf16.msra.mxu0 %v2535_v49  ;;  %v2454_v24 = vld [vmem:[#allocation3 + $0x4c] ss:$16 sps:$4 sm:$0xff]   ;;  %v2488_v49 = vld [vmem:[#allocation3 + $0x1c8] ss:$16 sps:$4 sm:$0xff]  }
  0x65   :  { %551 = vmatprep.subr.bf16.mxu1 %v2431_v25  ;;  %1431 = vmatprep.subr.bf16.mxu0 %v2536_v50  ;;  %v2452_v25 = vld [vmem:[#allocation3 + $0x48] ss:$16 sps:$4 sm:$0xff]   ;;  %v2493_v50 = vld [vmem:[#allocation3 + $0x1ec] ss:$16 sps:$4 sm:$0xff]  }
  0x68   :  { %552 = vmatpush1.bf16.msra.mxu1 %v2433_v26  ;;  %1432 = vmatpush1.bf16.msra.mxu0 %v2541_v51  ;;  %v2457_v26 = vld [vmem:[#allocation3 + $0x6c] ss:$16 sps:$4 sm:$0xff]   ;;  %v2491_v51 = vld [vmem:[#allocation3 + $0x1e8] ss:$16 sps:$4 sm:$0xff]  }
  0x69   :  { %553 = vmatprep.subr.bf16.mxu1 %v2434_v27  ;;  %1433 = vmatprep.subr.bf16.mxu0 %v2542_v52  ;;  %v2455_v27 = vld [vmem:[#allocation3 + $0x68] ss:$16 sps:$4 sm:$0xff]   ;;  %v2498_v52 = vld [vmem:[#allocation5 + $0xc] ss:$16 sps:$4 sm:$0xff]  }
  0x6c   :  { %554 = vmatpush1.bf16.msra.mxu1 %v2436_v28  ;;  %1434 = vmatpush1.bf16.msra.mxu0 %v2547_v53  ;;  %v2460_v28 = vld [vmem:[#allocation3 + $0x8c] ss:$16 sps:$4 sm:$0xff]   ;;  %v2496_v53 = vld [vmem:[#allocation5 + $0x8] ss:$16 sps:$4 sm:$0xff]  }
  0x6d   :  { %555 = vmatprep.subr.bf16.mxu1 %v2437_v29  ;;  %1435 = vmatprep.subr.bf16.mxu0 %v2548_v54  ;;  %v2458_v29 = vld [vmem:[#allocation3 + $0x88] ss:$16 sps:$4 sm:$0xff]   ;;  %v2504_v54 = vld [vmem:[#allocation5 + $0x2c] ss:$16 sps:$4 sm:$0xff]  }
  0x70   :  { %556 = vmatpush1.bf16.msra.mxu1 %v2439_v30  ;;  %1436 = vmatpush1.bf16.msra.mxu0 %v2553_v55  ;;  %v2463_v30 = vld [vmem:[#allocation3 + $0xac] ss:$16 sps:$4 sm:$0xff]   ;;  %v2502_v55 = vld [vmem:[#allocation5 + $0x28] ss:$16 sps:$4 sm:$0xff]  }
  0x71   :  { %557 = vmatprep.subr.bf16.mxu1 %v2440_v31  ;;  %1437 = vmatprep.subr.bf16.mxu0 %v2554_v56  ;;  %v2461_v31 = vld [vmem:[#allocation3 + $0xa8] ss:$16 sps:$4 sm:$0xff]   ;;  %v2510_v56 = vld [vmem:[#allocation5 + $0x4c] ss:$16 sps:$4 sm:$0xff]  }
  0x74   :  { %558 = vmatpush1.bf16.msra.mxu1 %v2442_v32  ;;  %1438 = vmatpush1.bf16.msra.mxu0 %v2559_v58  ;;  %v2466_v32 = vld [vmem:[#allocation3 + $0xcc] ss:$16 sps:$4 sm:$0xff]  }
  0x75   :  { %559 = vmatprep.subr.bf16.mxu1 %v2443_v33  ;;  %1439 = vmatprep.subr.bf16.mxu0 %v2560_v59  ;;  %v2464_v33 = vld [vmem:[#allocation3 + $0xc8] ss:$16 sps:$4 sm:$0xff]   ;;  %v2516_v58 = vld [vmem:[#allocation5 + $0x6c] ss:$16 sps:$4 sm:$0xff]  }
  0x76   :  { %v2514_v59 = vld [vmem:[#allocation5 + $0x68] ss:$16 sps:$4 sm:$0xff]  }
  0x78   :  { %560 = vmatpush1.bf16.msra.mxu1 %v2445_v34  ;;  %1440 = vmatpush1.bf16.msra.mxu0 %v2565_v61  ;;  %v2469_v34 = vld [vmem:[#allocation3 + $0xec] ss:$16 sps:$4 sm:$0xff]  }
  0x79   :  { %570 = vmatprep.subr.bf16.mxu1 %v2448_v35  ;;  %1441 = vmatprep.subr.bf16.mxu0 %v2566_v63  ;;  %v2467_v35 = vld [vmem:[#allocation3 + $0xe8] ss:$16 sps:$4 sm:$0xff]   ;;  %v2522_v61 = vld [vmem:[#allocation5 + $0x8c] ss:$16 sps:$4 sm:$0xff]  }
  0x7a   :  { %v2528_v63 = vld [vmem:[#allocation5 + $0xac] ss:$16 sps:$4 sm:$0xff]  }
  0x7c   :  { %1442 = vmatpush1.bf16.msra.mxu0 %v2571_v2  ;;  %v2526_v2 = vld [vmem:[#allocation5 + $0xa8] ss:$16 sps:$4 sm:$0xff]  }
  0x7d   :  { %1443 = vmatprep.subr.bf16.mxu0 %v2572_v4  ;;  %v2578_v4 = vld [vmem:[#allocation5 + $0x1c4] ss:$16 sps:$4 sm:$0xff]  }
  0x80   :  { %1444 = vmatpush1.bf16.msra.mxu0 %v2577_v7  ;;  %v2540_v7 = vld [vmem:[#allocation5 + $0xec] ss:$16 sps:$4 sm:$0xff]  }
  0x81   :  { %1445 = vmatprep.subr.bf16.mxu0 %v2578_v4  ;;  %v2623_v4 = vld [vmem:[#allocation5 + $0x2a8] ss:$16 sps:$4 sm:$0xff]  }
  0xba   :  { %v86_v10 = vpop.permute.xlu0 %85 }
  0xbb   :  { %v99_v11 = vmul.f32 %v92_v5, %v86_v10  ;;  %v100_v12 = vmul.f32 %v96_v6, %v86_v10  ;;  %v2583_v5 = vld [vmem:[#allocation5 + $0x1c0] ss:$16 sps:$4 sm:$0xff]   ;;  %v2532_v6 = vld [vmem:[#allocation5 + $0xc8] ss:$16 sps:$4 sm:$0xff]  }
  0xbc   :  { %1446 = vmatpush1.bf16.msra.mxu0 %v2583_v5  ;;  %v2538_v10 = vld [vmem:[#allocation5 + $0xe8] ss:$16 sps:$4 sm:$0xff]   ;;  %v2628_v5 = vld [vmem:[#allocation5 + $0x2c4] ss:$16 sps:$4 sm:$0xff]  }
  0xbd   :  { %v113_v13 = vadd.f32 %v106_v8, %v99_v11  ;;  %v114_v14 = vadd.f32 %v110_v9, %v100_v12  ;;  %v2584_v8 = vld [vmem:[#allocation5 + $0x1e4] ss:$16 sps:$4 sm:$0xff]   ;;  %v2589_v9 = vld [vmem:[#allocation5 + $0x1e0] ss:$16 sps:$4 sm:$0xff]   ;;  %v2546_v11 = vld [vmem:[#allocation5 + $0x10c] ss:$16 sps:$4 sm:$0xff]  }
  0xbe   :  { %1447 = vmatprep.subr.bf16.mxu0 %v2584_v8  ;;  %v2592_v12 = vld [vmem:[#allocation5 + $0x204] ss:$16 sps:$4 sm:$0xff]   ;;  %v2629_v8 = vld [vmem:[#allocation5 + $0x2c8] ss:$16 sps:$4 sm:$0xff]  }
  0xbf   :  { %v117_v15 = vmul.f32 0.01, %v113_v13  ;;  %vm116_vm0 = vcmp.gt.f32.partialorder %v114_v14, 0.0  ;;  %v118_v16 = vmul.f32 0.01, %v114_v14  ;;  %vm115_vm1 = vcmp.gt.f32.partialorder %v113_v13, 0.0 }
  0xc0   :  { %1448 = vmatpush1.bf16.msra.mxu0 %v2589_v9  ;;  %v2634_v9 = vld [vmem:[#allocation5 + $0x2e4] ss:$16 sps:$4 sm:$0xff]  }
  0xc1   :  { %v120_v17 = vsel %vm116_vm0, %v114_v14, %v118_v16  ;;  %v119_v18 = vsel %vm115_vm1, %v113_v13, %v117_v15  ;;  %v2544_v13 = vld [vmem:[#allocation5 + $0x108] ss:$16 sps:$4 sm:$0xff]   ;;  %1458 = vmatprep.subr.bf16.mxu0 %v2592_v12  ;;  %v2552_v14 = vld [vmem:[#allocation5 + $0x12c] ss:$16 sps:$4 sm:$0xff]  }
  0xc2   :  { %v122_v19 = vpack.c.bf16 %v120_v17, %v120_v17  ;;  %v2987_v21 = vpack.c.bf16 %v119_v18, %v119_v18  ;;  %v2550_v15 = vld [vmem:[#allocation5 + $0x128] ss:$16 sps:$4 sm:$0xff]   ;;  %v2558_v16 = vld [vmem:[#allocation5 + $0x14c] ss:$16 sps:$4 sm:$0xff]  }
  0xc3   :  { %v2556_v17 = vld [vmem:[#allocation5 + $0x148] ss:$16 sps:$4 sm:$0xff]   ;;  %v2564_v18 = vld [vmem:[#allocation5 + $0x16c] ss:$16 sps:$4 sm:$0xff]  }
  0xc4   :  { %561 = vmatprep.mubr.bf16.mxu1 %v122_v19  ;;  %v2635_v12 = vld [vmem:[#allocation5 + $0x2e8] ss:$16 sps:$4 sm:$0xff]  }
  0xc5   :  { %562 = vmatmul.mubr.bf16.vlgmr.msra.gmra.mrb[0].mxu1 %v2987_v21 }
  0xc6   :  { %571 = vmatpush1.bf16.msra.mxu1 %v2446_v20  ;;  %602 = vmatprep.mubr.bf16.mxu1 %v122_v19  ;;  %v2562_v19 = vld [vmem:[#allocation5 + $0x168] ss:$16 sps:$4 sm:$0xff]   ;;  %v2570_v20 = vld [vmem:[#allocation5 + $0x18c] ss:$16 sps:$4 sm:$0xff]  }
  0xc7   :  { %572 = vmatprep.subr.bf16.mxu1 %v2451_v22  ;;  %v2576_v22 = vld [vmem:[#allocation5 + $0x1ac] ss:$16 sps:$4 sm:$0xff]  }
  0xca   :  { %573 = vmatpush1.bf16.msra.mxu1 %v2449_v23  ;;  %v2574_v23 = vld [vmem:[#allocation5 + $0x1a8] ss:$16 sps:$4 sm:$0xff]  }
  0xcb   :  { %574 = vmatprep.subr.bf16.mxu1 %v2454_v24  ;;  %v2582_v24 = vld [vmem:[#allocation5 + $0x1cc] ss:$16 sps:$4 sm:$0xff]  }
  0xce   :  { %575 = vmatpush1.bf16.msra.mxu1 %v2452_v25  ;;  %v2580_v25 = vld [vmem:[#allocation5 + $0x1c8] ss:$16 sps:$4 sm:$0xff]  }
  0xcf   :  { %576 = vmatprep.subr.bf16.mxu1 %v2457_v26  ;;  %v2588_v26 = vld [vmem:[#allocation5 + $0x1ec] ss:$16 sps:$4 sm:$0xff]  }
  0xd2   :  { %577 = vmatpush1.bf16.msra.mxu1 %v2455_v27  ;;  %v2586_v27 = vld [vmem:[#allocation5 + $0x1e8] ss:$16 sps:$4 sm:$0xff]  }
  0xd3   :  { %578 = vmatprep.subr.bf16.mxu1 %v2460_v28  ;;  %v2595_v28 = vld [vmem:[#allocation5 + $0x20c] ss:$16 sps:$4 sm:$0xff]  }
  0xd6   :  { %579 = vmatpush1.bf16.msra.mxu1 %v2458_v29  ;;  %v2994_v29 = vld [vmem:[%s3043_s4] sm:$0xf] }
  0xd7   :  { %580 = vmatprep.subr.bf16.mxu1 %v2463_v30  ;;  %v192_v30 = vrot.slane %v2994_v29, %v2975_v0 }
  0xda   :  { %581 = vmatpush1.bf16.msra.mxu1 %v2461_v31  ;;  %v196_v31 = vrot.slane %v2994_v29, %v2978_v1 }
  0xdb   :  { %582 = vmatprep.subr.bf16.mxu1 %v2466_v32 }
  0xde   :  { %583 = vmatpush1.bf16.msra.mxu1 %v2464_v33 }
  0xdf   :  { %584 = vmatprep.subr.bf16.mxu1 %v2469_v34 }
  0xe2   :  { %585 = vmatpush1.bf16.msra.mxu1 %v2467_v35 }
  0xe3   :  { %586 = vmatprep.subr.bf16.mxu1 %v2472_v36 }
  0xe6   :  { %587 = vmatpush1.bf16.msra.mxu1 %v2470_v37 }
  0xe7   :  { %588 = vmatprep.subr.bf16.mxu1 %v2475_v38 }
  0xea   :  { %589 = vmatpush1.bf16.msra.mxu1 %v2473_v39 }
  0xeb   :  { %590 = vmatprep.subr.bf16.mxu1 %v2478_v40 }
  0xee   :  { %591 = vmatpush1.bf16.msra.mxu1 %v2476_v41 }
  0xef   :  { %592 = vmatprep.subr.bf16.mxu1 %v2481_v42 }
  0xf2   :  { %593 = vmatpush1.bf16.msra.mxu1 %v2479_v43  ;;  %v2590_v43 = vld [vmem:[#allocation5 + $0x200] ss:$16 sps:$4 sm:$0xff]  }
  0xf3   :  { %594 = vmatprep.subr.bf16.mxu1 %v2484_v44  ;;  %v2593_v44 = vld [vmem:[#allocation5 + $0x208] ss:$16 sps:$4 sm:$0xff]  }
  0xf6   :  { %595 = vmatpush1.bf16.msra.mxu1 %v2482_v45 }
  0xf7   :  { %596 = vmatprep.subr.bf16.mxu1 %v2487_v46  ;;  %v2598_v46 = vld [vmem:[#allocation5 + $0x224] ss:$16 sps:$4 sm:$0xff]  }
  0xfa   :  { %597 = vmatpush1.bf16.msra.mxu1 %v2485_v47  ;;  %v2601_v47 = vld [vmem:[#allocation5 + $0x22c] ss:$16 sps:$4 sm:$0xff]  }
  0xfb   :  { %598 = vmatprep.subr.bf16.mxu1 %v2490_v48  ;;  %v2596_v48 = vld [vmem:[#allocation5 + $0x220] ss:$16 sps:$4 sm:$0xff]  }
  0xfe   :  { %599 = vmatpush1.bf16.msra.mxu1 %v2488_v49  ;;  %v2599_v49 = vld [vmem:[#allocation5 + $0x228] ss:$16 sps:$4 sm:$0xff]  }
  0xff   :  { %600 = vmatprep.subr.bf16.mxu1 %v2493_v50  ;;  %v2604_v50 = vld [vmem:[#allocation5 + $0x244] ss:$16 sps:$4 sm:$0xff]  }
 0x102   :  { %601 = vmatpush1.bf16.msra.mxu1 %v2491_v51  ;;  %v2607_v51 = vld [vmem:[#allocation5 + $0x24c] ss:$16 sps:$4 sm:$0xff]  }
 0x103   :  { %1499 = vmatprep.subr.bf16.mxu1 %v2498_v52  ;;  %v2602_v52 = vld [vmem:[#allocation5 + $0x240] ss:$16 sps:$4 sm:$0xff]  }
 0x105   :  { %603 = vmatmul.mubr.bf16.vlgmr.msra.gmra.mrb[4].mxu1 %v2987_v21  ;;  %v2568_v21 = vld [vmem:[#allocation5 + $0x188] ss:$16 sps:$4 sm:$0xff]  }
 0x106   :  { %1500 = vmatpush1.bf16.msra.mxu1 %v2496_v53  ;;  %v2605_v53 = vld [vmem:[#allocation5 + $0x248] ss:$16 sps:$4 sm:$0xff]  }
 0x107   :  { %1501 = vmatprep.subr.bf16.mxu1 %v2504_v54  ;;  %v2610_v54 = vld [vmem:[#allocation5 + $0x264] ss:$16 sps:$4 sm:$0xff]  }
 0x10a   :  { %1502 = vmatpush1.bf16.msra.mxu1 %v2502_v55  ;;  %v2613_v55 = vld [vmem:[#allocation5 + $0x26c] ss:$16 sps:$4 sm:$0xff]  }
 0x10b   :  { %1503 = vmatprep.subr.bf16.mxu1 %v2510_v56  ;;  %v2608_v56 = vld [vmem:[#allocation5 + $0x260] ss:$16 sps:$4 sm:$0xff]  }
 0x10e   :  { %1504 = vmatpush1.bf16.msra.mxu1 %v2508_v57  ;;  %v2611_v57 = vld [vmem:[#allocation5 + $0x268] ss:$16 sps:$4 sm:$0xff]  }
 0x10f   :  { %1505 = vmatprep.subr.bf16.mxu1 %v2516_v58  ;;  %v2616_v58 = vld [vmem:[#allocation5 + $0x284] ss:$16 sps:$4 sm:$0xff]  }
 0x112   :  { %1506 = vmatpush1.bf16.msra.mxu1 %v2514_v59  ;;  %v2619_v59 = vld [vmem:[#allocation5 + $0x28c] ss:$16 sps:$4 sm:$0xff]  }
 0x113   :  { %1507 = vmatprep.subr.bf16.mxu1 %v2522_v61  ;;  %v2614_v61 = vld [vmem:[#allocation5 + $0x280] ss:$16 sps:$4 sm:$0xff]  }
 0x116   :  { %1508 = vmatpush1.bf16.msra.mxu1 %v2520_v62  ;;  %v2617_v62 = vld [vmem:[#allocation5 + $0x288] ss:$16 sps:$4 sm:$0xff]  }
 0x117   :  { %1509 = vmatprep.subr.bf16.mxu1 %v2528_v63  ;;  %v2622_v63 = vld [vmem:[#allocation5 + $0x2a4] ss:$16 sps:$4 sm:$0xff]  }
 0x11a   :  { %1510 = vmatpush1.bf16.msra.mxu1 %v2526_v2  ;;  %v2625_v2 = vld [vmem:[#allocation5 + $0x2ac] ss:$16 sps:$4 sm:$0xff]  }
 0x11b   :  { %1511 = vmatprep.subr.bf16.mxu1 %v2534_v3  ;;  %v2620_v3 = vld [vmem:[#allocation5 + $0x2a0] ss:$16 sps:$4 sm:$0xff]  }
 0x11e   :  { %1512 = vmatpush1.bf16.msra.mxu1 %v2532_v6  ;;  %v2631_v6 = vld [vmem:[#allocation5 + $0x2cc] ss:$16 sps:$4 sm:$0xff]  }
 0x11f   :  { %1513 = vmatprep.subr.bf16.mxu1 %v2540_v7  ;;  %v2626_v7 = vld [vmem:[#allocation5 + $0x2c0] ss:$16 sps:$4 sm:$0xff]  }
 0x122   :  { %1514 = vmatpush1.bf16.msra.mxu1 %v2538_v10  ;;  %v2637_v10 = vld [vmem:[#allocation5 + $0x2ec] ss:$16 sps:$4 sm:$0xff]  }
 0x123   :  { %1515 = vmatprep.subr.bf16.mxu1 %v2546_v11  ;;  %v2632_v11 = vld [vmem:[#allocation5 + $0x2e0] ss:$16 sps:$4 sm:$0xff]  }
 0x126   :  { %1516 = vmatpush1.bf16.msra.mxu1 %v2544_v13  ;;  %v2640_v13 = vld [vmem:[#allocation5 + $0x304] ss:$16 sps:$4 sm:$0xff]  }
 0x127   :  { %1517 = vmatprep.subr.bf16.mxu1 %v2552_v14  ;;  %v2643_v14 = vld [vmem:[#allocation5 + $0x30c] ss:$16 sps:$4 sm:$0xff]  }
 0x12a   :  { %1518 = vmatpush1.bf16.msra.mxu1 %v2550_v15  ;;  %v2638_v15 = vld [vmem:[#allocation5 + $0x300] ss:$16 sps:$4 sm:$0xff]  }
 0x12b   :  { %1519 = vmatprep.subr.bf16.mxu1 %v2558_v16  ;;  %v2641_v16 = vld [vmem:[#allocation5 + $0x308] ss:$16 sps:$4 sm:$0xff]  }
 0x12e   :  { %1520 = vmatpush1.bf16.msra.mxu1 %v2556_v17  ;;  %v2646_v17 = vld [vmem:[#allocation5 + $0x324] ss:$16 sps:$4 sm:$0xff]  }
 0x12f   :  { %1521 = vmatprep.subr.bf16.mxu1 %v2564_v18  ;;  %v2649_v18 = vld [vmem:[#allocation5 + $0x32c] ss:$16 sps:$4 sm:$0xff]  }
 0x132   :  { %1522 = vmatpush1.bf16.msra.mxu1 %v2562_v19  ;;  %v2644_v19 = vld [vmem:[#allocation5 + $0x320] ss:$16 sps:$4 sm:$0xff]  }
 0x133   :  { %1523 = vmatprep.subr.bf16.mxu1 %v2570_v20  ;;  %v2647_v20 = vld [vmem:[#allocation5 + $0x328] ss:$16 sps:$4 sm:$0xff]  }
 0x136   :  { %1524 = vmatpush1.bf16.msra.mxu1 %v2568_v21  ;;  %v2652_v21 = vld [vmem:[#allocation5 + $0x344] ss:$16 sps:$4 sm:$0xff]  }
 0x137   :  { %1525 = vmatprep.subr.bf16.mxu1 %v2576_v22  ;;  %v2655_v22 = vld [vmem:[#allocation5 + $0x34c] ss:$16 sps:$4 sm:$0xff]  }
 0x13a   :  { %1526 = vmatpush1.bf16.msra.mxu1 %v2574_v23  ;;  %v2650_v23 = vld [vmem:[#allocation5 + $0x340] ss:$16 sps:$4 sm:$0xff]  }
 0x13b   :  { %1527 = vmatprep.subr.bf16.mxu1 %v2582_v24  ;;  %v2653_v24 = vld [vmem:[#allocation5 + $0x348] ss:$16 sps:$4 sm:$0xff]  }
 0x13e   :  { %1528 = vmatpush1.bf16.msra.mxu1 %v2580_v25  ;;  %v2658_v25 = vld [vmem:[#allocation5 + $0x364] ss:$16 sps:$4 sm:$0xff]  }
 0x13f   :  { %1529 = vmatprep.subr.bf16.mxu1 %v2588_v26  ;;  %v2661_v26 = vld [vmem:[#allocation5 + $0x36c] ss:$16 sps:$4 sm:$0xff]  }
 0x142   :  { %1530 = vmatpush1.bf16.msra.mxu1 %v2586_v27  ;;  %v2656_v27 = vld [vmem:[#allocation5 + $0x360] ss:$16 sps:$4 sm:$0xff]  }
 0x143   :  { %1540 = vmatprep.subr.bf16.mxu1 %v2595_v28  ;;  %v2659_v28 = vld [vmem:[#allocation5 + $0x368] ss:$16 sps:$4 sm:$0xff]  }
 0x198   :  { %v563_v32 = vpop.f32.mrb[0].mxu1 }
 0x199   :  { %v564_v33 = vadd.f32 %v563_v32, %v192_v30  ;;  %v565_v34 = vpop.f32.mrb[1].mxu1  ;;  %v2664_v30 = vld [vmem:[#allocation5 + $0x384] ss:$16 sps:$4 sm:$0xff]   ;;  %v2662_v32 = vld [vmem:[#allocation5 + $0x380] ss:$16 sps:$4 sm:$0xff]  }
 0x19a   :  { %v566_v35 = vadd.f32 %v565_v34, %v196_v31  ;;  %v567_v36 = vpop.f32.mrb[2].mxu1  ;;  %v2667_v31 = vld [vmem:[#allocation5 + $0x38c] ss:$16 sps:$4 sm:$0xff]   ;;  %v2670_v34 = vld [vmem:[#allocation5 + $0x3a4] ss:$16 sps:$4 sm:$0xff]  }
 0x19b   :  { %vm611_vm2 = vcmp.gt.f32.partialorder %v564_v33, 0.0  ;;  %v615_v37 = vmul.f32 0.01, %v564_v33  ;;  %v568_v38 = vpop.f32.mrb[3].mxu1  ;;  %v199_v36 = vsub.s32 2, %v2969_v60 }
 0x19c   :  { %v616_v39 = vmul.f32 0.01, %v566_v35  ;;  %vm612_vm3 = vcmp.gt.f32.partialorder %v566_v35, 0.0  ;;  %v2668_v38 = vld [vmem:[#allocation5 + $0x3a0] ss:$16 sps:$4 sm:$0xff]  }
 0x19d   :  { %v619_v40 = vsel %vm611_vm2, %v564_v33, %v615_v37  ;;  %v2665_v33 = vld [vmem:[#allocation5 + $0x388] ss:$16 sps:$4 sm:$0xff]   ;;  %v203_v37 = vsub.s32 3, %v2969_v60 }
 0x19e   :  { %v620_v41 = vsel %vm612_vm3, %v566_v35, %v616_v39  ;;  %v623_v45 = vpack.c.bf16 %v619_v40, %v619_v40  ;;  %v2673_v35 = vld [vmem:[#allocation5 + $0x3ac] ss:$16 sps:$4 sm:$0xff]   ;;  %v2671_v39 = vld [vmem:[#allocation5 + $0x3a8] ss:$16 sps:$4 sm:$0xff]   ;;  %v2676_v40 = vld [vmem:[#allocation5 + $0x3c4] ss:$16 sps:$4 sm:$0xff]  }
 0x19f   :  { %v624_v42 = vpack.c.bf16 %v620_v41, %v620_v41  ;;  %v2679_v41 = vld [vmem:[#allocation5 + $0x3cc] ss:$16 sps:$4 sm:$0xff]  }
 0x1a1   :  { %1449 = vmatprep.mubr.bf16.mxu0 %v624_v42  ;;  %1531 = vmatprep.mubr.bf16.mxu1 %v624_v42  ;;  %v200_v42 = vrot.slane %v2994_v29, %v199_v36 }
 0x1a2   :  { %1450 = vmatmul.mubr.bf16.vlgmr.msra.gmra.mrb[0].mxu0 %v623_v45  ;;  %1532 = vmatmul.mubr.bf16.vlgmr.msra.gmra.mrb[8].mxu1 %v623_v45  ;;  %v2677_v45 = vld [vmem:[#allocation5 + $0x3c8] ss:$16 sps:$4 sm:$0xff]  }
 0x1a3   :  { %1459 = vmatpush1.bf16.msra.mxu0 %v2590_v43  ;;  %1541 = vmatpush1.bf16.msra.mxu1 %v2593_v44  ;;  %v204_v43 = vrot.slane %v2994_v29, %v203_v37  ;;  %v2674_v44 = vld [vmem:[#allocation5 + $0x3c0] ss:$16 sps:$4 sm:$0xff]   ;;  %v2683_v29 = vld [vmem:[#allocation5 + $0x3e8] ss:$16 sps:$4 sm:$0xff]  }
 0x1a4   :  { %1460 = vmatprep.subr.bf16.mxu0 %v2598_v46  ;;  %1542 = vmatprep.subr.bf16.mxu1 %v2601_v47  ;;  %v2682_v47 = vld [vmem:[#allocation5 + $0x3e4] ss:$16 sps:$4 sm:$0xff]  }
 0x1a7   :  { %1461 = vmatpush1.bf16.msra.mxu0 %v2596_v48  ;;  %1543 = vmatpush1.bf16.msra.mxu1 %v2599_v49  ;;  %v2685_v48 = vld [vmem:[#allocation5 + $0x3ec] ss:$16 sps:$4 sm:$0xff]  }
 0x1a8   :  { %1462 = vmatprep.subr.bf16.mxu0 %v2604_v50  ;;  %1544 = vmatprep.subr.bf16.mxu1 %v2607_v51 }
 0x1ab   :  { %1463 = vmatpush1.bf16.msra.mxu0 %v2602_v52  ;;  %1545 = vmatpush1.bf16.msra.mxu1 %v2605_v53  ;;  %v2680_v53 = vld [vmem:[#allocation5 + $0x3e0] ss:$16 sps:$4 sm:$0xff]  }
 0x1ac   :  { %1464 = vmatprep.subr.bf16.mxu0 %v2610_v54  ;;  %1546 = vmatprep.subr.bf16.mxu1 %v2613_v55 }
 0x1af   :  { %1465 = vmatpush1.bf16.msra.mxu0 %v2608_v56  ;;  %1547 = vmatpush1.bf16.msra.mxu1 %v2611_v57  ;;  %v2688_v57 = vld [vmem:[#allocation7 + $0x4] ss:$8 sps:$4 sm:$0xff]  }
 0x1b0   :  { %1466 = vmatprep.subr.bf16.mxu0 %v2616_v58  ;;  %1548 = vmatprep.subr.bf16.mxu1 %v2619_v59 }
 0x1b3   :  { %1467 = vmatpush1.bf16.msra.mxu0 %v2614_v61  ;;  %1549 = vmatpush1.bf16.msra.mxu1 %v2617_v62  ;;  %v2686_v62 = vld [vmem:[#allocation7] ss:$8 sps:$4 sm:$0xff]  }
 0x1b4   :  { %1468 = vmatprep.subr.bf16.mxu0 %v2622_v63  ;;  %1550 = vmatprep.subr.bf16.mxu1 %v2625_v2  ;;  %v2691_v2 = vld [vmem:[#allocation7 + $0x14] ss:$8 sps:$4 sm:$0xff]  }
 0x1b7   :  { %1469 = vmatpush1.bf16.msra.mxu0 %v2620_v3  ;;  %1551 = vmatpush1.bf16.msra.mxu1 %v2623_v4  ;;  %v2689_v3 = vld [vmem:[#allocation7 + $0x10] ss:$8 sps:$4 sm:$0xff]   ;;  %v2694_v4 = vld [vmem:[#allocation7 + $0x24] ss:$8 sps:$4 sm:$0xff]  }
 0x1b8   :  { %1470 = vmatprep.subr.bf16.mxu0 %v2628_v5  ;;  %1552 = vmatprep.subr.bf16.mxu1 %v2631_v6  ;;  %v2692_v5 = vld [vmem:[#allocation7 + $0x20] ss:$8 sps:$4 sm:$0xff]   ;;  %v2697_v6 = vld [vmem:[#allocation7 + $0x34] ss:$8 sps:$4 sm:$0xff]  }
 0x1bb   :  { %1471 = vmatpush1.bf16.msra.mxu0 %v2626_v7  ;;  %1553 = vmatpush1.bf16.msra.mxu1 %v2629_v8  ;;  %v2695_v7 = vld [vmem:[#allocation7 + $0x30] ss:$8 sps:$4 sm:$0xff]   ;;  %v2700_v8 = vld [vmem:[#allocation7 + $0x44] ss:$8 sps:$4 sm:$0xff]  }
 0x1bc   :  { %1472 = vmatprep.subr.bf16.mxu0 %v2634_v9  ;;  %1554 = vmatprep.subr.bf16.mxu1 %v2637_v10  ;;  %v2698_v9 = vld [vmem:[#allocation7 + $0x40] ss:$8 sps:$4 sm:$0xff]   ;;  %v2703_v10 = vld [vmem:[#allocation7 + $0x54] ss:$8 sps:$4 sm:$0xff]  }
 0x1bf   :  { %1473 = vmatpush1.bf16.msra.mxu0 %v2632_v11  ;;  %1555 = vmatpush1.bf16.msra.mxu1 %v2635_v12  ;;  %v2701_v11 = vld [vmem:[#allocation7 + $0x50] ss:$8 sps:$4 sm:$0xff]   ;;  %v2706_v12 = vld [vmem:[#allocation7 + $0x64] ss:$8 sps:$4 sm:$0xff]  }
 0x1c0   :  { %1474 = vmatprep.subr.bf16.mxu0 %v2640_v13  ;;  %1556 = vmatprep.subr.bf16.mxu1 %v2643_v14  ;;  %v2704_v13 = vld [vmem:[#allocation7 + $0x60] ss:$8 sps:$4 sm:$0xff]   ;;  %v2709_v14 = vld [vmem:[#allocation7 + $0x74] ss:$8 sps:$4 sm:$0xff]  }
 0x1c3   :  { %1475 = vmatpush1.bf16.msra.mxu0 %v2638_v15  ;;  %1557 = vmatpush1.bf16.msra.mxu1 %v2641_v16  ;;  %v2707_v15 = vld [vmem:[#allocation7 + $0x70] ss:$8 sps:$4 sm:$0xff]   ;;  %v2712_v16 = vld [vmem:[#allocation7 + $0x84] ss:$8 sps:$4 sm:$0xff]  }
 0x1c4   :  { %1476 = vmatprep.subr.bf16.mxu0 %v2646_v17  ;;  %1558 = vmatprep.subr.bf16.mxu1 %v2649_v18  ;;  %v2710_v17 = vld [vmem:[#allocation7 + $0x80] ss:$8 sps:$4 sm:$0xff]   ;;  %v2715_v18 = vld [vmem:[#allocation7 + $0x94] ss:$8 sps:$4 sm:$0xff]  }
 0x1c7   :  { %1477 = vmatpush1.bf16.msra.mxu0 %v2644_v19  ;;  %1559 = vmatpush1.bf16.msra.mxu1 %v2647_v20  ;;  %v2713_v19 = vld [vmem:[#allocation7 + $0x90] ss:$8 sps:$4 sm:$0xff]   ;;  %v2718_v20 = vld [vmem:[#allocation7 + $0xa4] ss:$8 sps:$4 sm:$0xff]  }
 0x1c8   :  { %1478 = vmatprep.subr.bf16.mxu0 %v2652_v21  ;;  %1560 = vmatprep.subr.bf16.mxu1 %v2655_v22  ;;  %v2716_v21 = vld [vmem:[#allocation7 + $0xa0] ss:$8 sps:$4 sm:$0xff]   ;;  %v2721_v22 = vld [vmem:[#allocation7 + $0xb4] ss:$8 sps:$4 sm:$0xff]  }
 0x1cb   :  { %1479 = vmatpush1.bf16.msra.mxu0 %v2650_v23  ;;  %1561 = vmatpush1.bf16.msra.mxu1 %v2653_v24  ;;  %v2719_v23 = vld [vmem:[#allocation7 + $0xb0] ss:$8 sps:$4 sm:$0xff]   ;;  %v2724_v24 = vld [vmem:[#allocation7 + $0xc4] ss:$8 sps:$4 sm:$0xff]  }
 0x1cc   :  { %1480 = vmatprep.subr.bf16.mxu0 %v2658_v25  ;;  %1562 = vmatprep.subr.bf16.mxu1 %v2661_v26  ;;  %v2722_v25 = vld [vmem:[#allocation7 + $0xc0] ss:$8 sps:$4 sm:$0xff]   ;;  %v2727_v26 = vld [vmem:[#allocation7 + $0xd4] ss:$8 sps:$4 sm:$0xff]  }
 0x1cf   :  { %1481 = vmatpush1.bf16.msra.mxu0 %v2656_v27  ;;  %1563 = vmatpush1.bf16.msra.mxu1 %v2659_v28  ;;  %v2725_v27 = vld [vmem:[#allocation7 + $0xd0] ss:$8 sps:$4 sm:$0xff]   ;;  %v2730_v28 = vld [vmem:[#allocation7 + $0xe4] ss:$8 sps:$4 sm:$0xff]  }
 0x1d0   :  { %1482 = vmatprep.subr.bf16.mxu0 %v2664_v30  ;;  %1564 = vmatprep.subr.bf16.mxu1 %v2667_v31  ;;  %v2728_v30 = vld [vmem:[#allocation7 + $0xe0] ss:$8 sps:$4 sm:$0xff]   ;;  %v2733_v31 = vld [vmem:[#allocation7 + $0xf4] ss:$8 sps:$4 sm:$0xff]  }
 0x1d3   :  { %1483 = vmatpush1.bf16.msra.mxu0 %v2662_v32  ;;  %1565 = vmatpush1.bf16.msra.mxu1 %v2665_v33  ;;  %v2731_v32 = vld [vmem:[#allocation7 + $0xf0] ss:$8 sps:$4 sm:$0xff]   ;;  %v2736_v33 = vld [vmem:[#allocation7 + $0x104] ss:$8 sps:$4 sm:$0xff]  }
 0x1d4   :  { %1484 = vmatprep.subr.bf16.mxu0 %v2670_v34  ;;  %1566 = vmatprep.subr.bf16.mxu1 %v2673_v35  ;;  %v3011_v34 = vld [vmem:[%s3045_s6] sm:$0xf] }
 0x1d5   :  { %v760_v35 = vrot.slane %v3011_v34, %v2975_v0 }
 0x1d7   :  { %1485 = vmatpush1.bf16.msra.mxu0 %v2668_v38  ;;  %1567 = vmatpush1.bf16.msra.mxu1 %v2671_v39  ;;  %v764_v38 = vrot.slane %v3011_v34, %v2978_v1  ;;  %v772_v39 = vrot.slane %v3011_v34, %v203_v37 }
 0x1d8   :  { %v604_v46 = vpop.f32.mrb[4].mxu1  ;;  %1486 = vmatprep.subr.bf16.mxu0 %v2676_v40  ;;  %1568 = vmatprep.subr.bf16.mxu1 %v2679_v41 }
 0x1d9   :  { %v605_v49 = vadd.f32 %v604_v46, %v200_v42  ;;  %v606_v50 = vpop.f32.mrb[5].mxu1 }
 0x1da   :  { %v607_v51 = vadd.f32 %v606_v50, %v204_v43  ;;  %v608_v52 = vpop.f32.mrb[6].mxu1 }
 0x1db   :  { %vm613_vm4 = vcmp.gt.f32.partialorder %v605_v49, 0.0  ;;  %v617_v54 = vmul.f32 0.01, %v605_v49  ;;  %v609_v55 = vpop.f32.mrb[7].mxu1  ;;  %1487 = vmatpush1.bf16.msra.mxu0 %v2674_v44  ;;  %1569 = vmatpush1.bf16.msra.mxu1 %v2677_v45 }
 0x1dc   :  { %vm614_vm5 = vcmp.gt.f32.partialorder %v607_v51, 0.0  ;;  %v618_v56 = vmul.f32 0.01, %v607_v51  ;;  %1488 = vmatprep.subr.bf16.mxu0 %v2682_v47  ;;  %1570 = vmatprep.subr.bf16.mxu1 %v2685_v48 }
 0x1dd   :  { %v621_v58 = vsel %vm613_vm4, %v605_v49, %v617_v54 }
 0x1de   :  { %v622_v59 = vsel %vm614_vm5, %v607_v51, %v618_v56  ;;  %v625_v63 = vpack.c.bf16 %v621_v58, %v621_v58  ;;  %v2734_v56 = vld [vmem:[#allocation7 + $0x100] ss:$8 sps:$4 sm:$0xff]   ;;  %v2739_v58 = vld [vmem:[#allocation7 + $0x114] ss:$8 sps:$4 sm:$0xff]  }
 0x1df   :  { %1489 = vmatpush1.bf16.msra.mxu0 %v2680_v53  ;;  %1571 = vmatpush1.bf16.msra.mxu1 %v2683_v29  ;;  %v626_v61 = vpack.c.bf16 %v622_v59, %v622_v59 }
 0x1e0   :  { %1993 = vmatprep.subr.bf16.mxu0 %v2688_v57 }
 0x1e1   :  { %1490 = vmatprep.mubr.bf16.mxu0 %v626_v61  ;;  %1572 = vmatprep.mubr.bf16.mxu1 %v626_v61  ;;  %v2737_v61 = vld [vmem:[#allocation7 + $0x110] ss:$8 sps:$4 sm:$0xff]  }
 0x1e2   :  { %1491 = vmatmul.mubr.bf16.vlgmr.msra.gmra.mrb[0].mxu0 %v625_v63  ;;  %1573 = vmatmul.mubr.bf16.vlgmr.msra.gmra.mrb[8].mxu1 %v625_v63  ;;  %v2740_v63 = vld [vmem:[#allocation7 + $0x120] ss:$8 sps:$4 sm:$0xff]  }
 0x1e3   :  { %1994 = vmatpush1.bf16.msra.mxu0 %v2686_v62  ;;  %v2742_v62 = vld [vmem:[#allocation7 + $0x124] ss:$8 sps:$4 sm:$0xff]  }
 0x1e4   :  { %1995 = vmatprep.subr.bf16.mxu0 %v2691_v2  ;;  %v2745_v2 = vld [vmem:[#allocation7 + $0x134] ss:$8 sps:$4 sm:$0xff]  }
 0x1e7   :  { %1996 = vmatpush1.bf16.msra.mxu0 %v2689_v3  ;;  %v2743_v3 = vld [vmem:[#allocation7 + $0x130] ss:$8 sps:$4 sm:$0xff]  }
 0x1e8   :  { %1997 = vmatprep.subr.bf16.mxu0 %v2694_v4  ;;  %v2748_v4 = vld [vmem:[#allocation7 + $0x144] ss:$8 sps:$4 sm:$0xff]  }
 0x1eb   :  { %1998 = vmatpush1.bf16.msra.mxu0 %v2692_v5  ;;  %v2746_v5 = vld [vmem:[#allocation7 + $0x140] ss:$8 sps:$4 sm:$0xff]  }
 0x1ec   :  { %1999 = vmatprep.subr.bf16.mxu0 %v2697_v6  ;;  %v2751_v6 = vld [vmem:[#allocation7 + $0x154] ss:$8 sps:$4 sm:$0xff]  }
 0x1ef   :  { %2000 = vmatpush1.bf16.msra.mxu0 %v2695_v7  ;;  %v2749_v7 = vld [vmem:[#allocation7 + $0x150] ss:$8 sps:$4 sm:$0xff]  }
 0x1f0   :  { %2001 = vmatprep.subr.bf16.mxu0 %v2700_v8  ;;  %v2754_v8 = vld [vmem:[#allocation7 + $0x164] ss:$8 sps:$4 sm:$0xff]  }
 0x1f3   :  { %2002 = vmatpush1.bf16.msra.mxu0 %v2698_v9  ;;  %v2752_v9 = vld [vmem:[#allocation7 + $0x160] ss:$8 sps:$4 sm:$0xff]  }
 0x1f4   :  { %2003 = vmatprep.subr.bf16.mxu0 %v2703_v10  ;;  %v2757_v10 = vld [vmem:[#allocation7 + $0x174] ss:$8 sps:$4 sm:$0xff]  }
 0x1f7   :  { %2004 = vmatpush1.bf16.msra.mxu0 %v2701_v11  ;;  %v2755_v11 = vld [vmem:[#allocation7 + $0x170] ss:$8 sps:$4 sm:$0xff]  }
 0x1f8   :  { %2005 = vmatprep.subr.bf16.mxu0 %v2706_v12  ;;  %v2760_v12 = vld [vmem:[#allocation7 + $0x184] ss:$8 sps:$4 sm:$0xff]  }
 0x1fb   :  { %2006 = vmatpush1.bf16.msra.mxu0 %v2704_v13  ;;  %v2758_v13 = vld [vmem:[#allocation7 + $0x180] ss:$8 sps:$4 sm:$0xff]  }
 0x1fc   :  { %2007 = vmatprep.subr.bf16.mxu0 %v2709_v14  ;;  %v2763_v14 = vld [vmem:[#allocation7 + $0x194] ss:$8 sps:$4 sm:$0xff]  }
 0x1ff   :  { %2008 = vmatpush1.bf16.msra.mxu0 %v2707_v15  ;;  %v2761_v15 = vld [vmem:[#allocation7 + $0x190] ss:$8 sps:$4 sm:$0xff]  }
 0x200   :  { %2009 = vmatprep.subr.bf16.mxu0 %v2712_v16  ;;  %v2766_v16 = vld [vmem:[#allocation7 + $0x1a4] ss:$8 sps:$4 sm:$0xff]  }
 0x203   :  { %2010 = vmatpush1.bf16.msra.mxu0 %v2710_v17  ;;  %v2764_v17 = vld [vmem:[#allocation7 + $0x1a0] ss:$8 sps:$4 sm:$0xff]  }
 0x204   :  { %2011 = vmatprep.subr.bf16.mxu0 %v2715_v18  ;;  %v2769_v18 = vld [vmem:[#allocation7 + $0x1b4] ss:$8 sps:$4 sm:$0xff]  }
 0x207   :  { %2012 = vmatpush1.bf16.msra.mxu0 %v2713_v19  ;;  %v2767_v19 = vld [vmem:[#allocation7 + $0x1b0] ss:$8 sps:$4 sm:$0xff]  }
 0x208   :  { %2013 = vmatprep.subr.bf16.mxu0 %v2718_v20  ;;  %v2772_v20 = vld [vmem:[#allocation7 + $0x1c4] ss:$8 sps:$4 sm:$0xff]  }
 0x20b   :  { %2014 = vmatpush1.bf16.msra.mxu0 %v2716_v21  ;;  %v2770_v21 = vld [vmem:[#allocation7 + $0x1c0] ss:$8 sps:$4 sm:$0xff]  }
 0x20c   :  { %2015 = vmatprep.subr.bf16.mxu0 %v2721_v22  ;;  %v2775_v22 = vld [vmem:[#allocation7 + $0x1d4] ss:$8 sps:$4 sm:$0xff]  }
 0x20f   :  { %2016 = vmatpush1.bf16.msra.mxu0 %v2719_v23  ;;  %v768_v23 = vrot.slane %v3011_v34, %v199_v36  ;;  %v1661_v36 = vld [vmem:[%s3047_s8] sm:$0x3] }
 0x210   :  { %2017 = vmatprep.subr.bf16.mxu0 %v2724_v24  ;;  %v2773_v24 = vld [vmem:[#allocation7 + $0x1d0] ss:$8 sps:$4 sm:$0xff]   ;;  %v1670_v34 = vrot.slane %v1661_v36, %v2978_v1 }
 0x213   :  { %2018 = vmatpush1.bf16.msra.mxu0 %v2722_v25  ;;  %v2778_v25 = vld [vmem:[#allocation7 + $0x1e4] ss:$8 sps:$4 sm:$0xff]  }
 0x214   :  { %2019 = vmatprep.subr.bf16.mxu0 %v2727_v26 }
 0x217   :  { %2020 = vmatpush1.bf16.msra.mxu0 %v2725_v27  ;;  %v2776_v27 = vld [vmem:[#allocation7 + $0x1e0] ss:$8 sps:$4 sm:$0xff]  }
 0x218   :  { %2021 = vmatprep.subr.bf16.mxu0 %v2730_v28  ;;  %v2781_v28 = vld [vmem:[#allocation7 + $0x1f4] ss:$8 sps:$4 sm:$0xff]  }
 0x21b   :  { %2022 = vmatpush1.bf16.msra.mxu0 %v2728_v30 }
 0x21c   :  { %2023 = vmatprep.subr.bf16.mxu0 %v2733_v31  ;;  %v2779_v31 = vld [vmem:[#allocation7 + $0x1f0] ss:$8 sps:$4 sm:$0xff]  }
 0x21f   :  { %2024 = vmatpush1.bf16.msra.mxu0 %v2731_v32 }
 0x220   :  { %2034 = vmatprep.subr.bf16.mxu0 %v2736_v33  ;;  %v1666_v33 = vrot.slane %v1661_v36, %v2975_v0 }
 0x2b5   :  { %v1492_v40 = vpop.f32.mrb[0].mxu0  ;;  %v3020_v41 = vpop.f32.mrb[8].mxu1 }
 0x2b6   :  { %v2371_v42 = vadd.f32 %v1492_v40, %v760_v35  ;;  %v1494_v43 = vpop.f32.mrb[1].mxu0  ;;  %v1576_v44 = vpop.f32.mrb[9].mxu1  ;;  %v2373_v26 = vadd.f32 %v3020_v41, %v768_v23  ;;  %v2081_v35 = vld [vmem:[%s3048_s9] sm:$0x3] }
 0x2b7   :  { %v2372_v45 = vadd.f32 %v1494_v43, %v764_v38  ;;  %v2374_v46 = vadd.f32 %v1576_v44, %v772_v39  ;;  %v1496_v47 = vpop.f32.mrb[2].mxu0  ;;  %v1578_v48 = vpop.f32.mrb[10].mxu1  ;;  %v2086_v43 = vrot.slane %v2081_v35, %v2975_v0 }
 0x2b8   :  { %vm1581_vm6 = vcmp.gt.f32.partialorder %v2371_v42, 0.0  ;;  %v1585_v49 = vmul.f32 0.01, %v2371_v42  ;;  %v1497_v53 = vpop.f32.mrb[3].mxu0  ;;  %v1579_v54 = vpop.f32.mrb[11].mxu1  ;;  %vm1583_vm9 = vcmp.gt.f32.partialorder %v2373_v26, 0.0 }
 0x2b9   :  { %vm1582_vm7 = vcmp.gt.f32.partialorder %v2372_v45, 0.0  ;;  %v1586_v50 = vmul.f32 0.01, %v2372_v45  ;;  %vm1584_vm8 = vcmp.gt.f32.partialorder %v2374_v46, 0.0  ;;  %v1588_v51 = vmul.f32 0.01, %v2374_v46 }
 0x2ba   :  { %v1589_v52 = vsel %vm1581_vm6, %v2371_v42, %v1585_v49  ;;  %v1587_v30 = vmul.f32 0.01, %v2373_v26  ;;  %v2370_v53 = vld [vmem:[#allocation2] ss:$0 sm:$0xff] }
 0x2bb   :  { %v1590_v37 = vsel %vm1582_vm7, %v2372_v45, %v1586_v50  ;;  %v1592_v55 = vsel %vm1584_vm8, %v2374_v46, %v1588_v51  ;;  %v1593_v57 = vpack.c.bf16 %v1589_v52, %v1589_v52  ;;  %v2090_v46 = vrot.slane %v2081_v35, %v2978_v1 }
 0x2bc   :  { %v1594_v29 = vpack.c.bf16 %v1590_v37, %v1590_v37  ;;  %v1596_v59 = vpack.c.bf16 %v1592_v55, %v1592_v55  ;;  %v1591_v32 = vsel %vm1583_vm9, %v2373_v26, %v1587_v30 }
 0x2bd   :  { %v1595_v60 = vpack.c.bf16 %v1591_v32, %v1591_v32 }
 0x2be   :  { %2025 = vmatprep.mubr.bf16.mxu0 %v1594_v29 }
 0x2bf   :  { %2026 = vmatmul.mubr.bf16.vlgmr.msra.gmra.mrb[4].mxu0 %v1593_v57 }
 0x2c0   :  { %2035 = vmatpush1.bf16.msra.mxu0 %v2734_v56  ;;  %2066 = vmatprep.mubr.bf16.mxu0 %v1596_v59 }
 0x2c1   :  { %2036 = vmatprep.subr.bf16.mxu0 %v2739_v58 }
 0x2c4   :  { %2037 = vmatpush1.bf16.msra.mxu0 %v2737_v61 }
 0x2c5   :  { %2038 = vmatprep.subr.bf16.mxu0 %v2742_v62 }
 0x2c8   :  { %2039 = vmatpush1.bf16.msra.mxu0 %v2740_v63 }
 0x2c9   :  { %2040 = vmatprep.subr.bf16.mxu0 %v2745_v2 }
 0x2cc   :  { %2041 = vmatpush1.bf16.msra.mxu0 %v2743_v3 }
 0x2cd   :  { %2042 = vmatprep.subr.bf16.mxu0 %v2748_v4 }
 0x2d0   :  { %2043 = vmatpush1.bf16.msra.mxu0 %v2746_v5 }
 0x2d1   :  { %2044 = vmatprep.subr.bf16.mxu0 %v2751_v6 }
 0x2d4   :  { %2045 = vmatpush1.bf16.msra.mxu0 %v2749_v7 }
 0x2d5   :  { %2046 = vmatprep.subr.bf16.mxu0 %v2754_v8 }
 0x2d8   :  { %2047 = vmatpush1.bf16.msra.mxu0 %v2752_v9 }
 0x2d9   :  { %2048 = vmatprep.subr.bf16.mxu0 %v2757_v10 }
 0x2dc   :  { %2049 = vmatpush1.bf16.msra.mxu0 %v2755_v11 }
 0x2dd   :  { %2050 = vmatprep.subr.bf16.mxu0 %v2760_v12 }
 0x2e0   :  { %2051 = vmatpush1.bf16.msra.mxu0 %v2758_v13 }
 0x2e1   :  { %2052 = vmatprep.subr.bf16.mxu0 %v2763_v14 }
 0x2e4   :  { %2053 = vmatpush1.bf16.msra.mxu0 %v2761_v15 }
 0x2e5   :  { %2054 = vmatprep.subr.bf16.mxu0 %v2766_v16 }
 0x2e8   :  { %2055 = vmatpush1.bf16.msra.mxu0 %v2764_v17 }
 0x2e9   :  { %2056 = vmatprep.subr.bf16.mxu0 %v2769_v18 }
 0x2ec   :  { %2057 = vmatpush1.bf16.msra.mxu0 %v2767_v19 }
 0x2ed   :  { %2058 = vmatprep.subr.bf16.mxu0 %v2772_v20 }
 0x2f0   :  { %2059 = vmatpush1.bf16.msra.mxu0 %v2770_v21 }
 0x2f1   :  { %2060 = vmatprep.subr.bf16.mxu0 %v2775_v22 }
 0x2f4   :  { %2061 = vmatpush1.bf16.msra.mxu0 %v2773_v24 }
 0x2f5   :  { %2062 = vmatprep.subr.bf16.mxu0 %v2778_v25 }
 0x2f8   :  { %2063 = vmatpush1.bf16.msra.mxu0 %v2776_v27 }
 0x2f9   :  { %2064 = vmatprep.subr.bf16.mxu0 %v2781_v28 }
 0x2fc   :  { %2065 = vmatpush1.bf16.msra.mxu0 %v2779_v31 }
 0x2ff   :  { %2067 = vmatmul.mubr.bf16.vlgmr.msra.gmra.mrb[4].mxu0 %v1595_v60 }
 0x3d2   :  { %v2068_v38 = vpop.f32.mrb[4].mxu0 }
 0x3d3   :  { %v2375_v39 = vadd.f32 %v2068_v38, %v1666_v33  ;;  %v2070_v40 = vpop.f32.mrb[5].mxu0 }
 0x3d4   :  { %v2376_v41 = vadd.f32 %v2070_v40, %v1670_v34  ;;  %v2072_v42 = vpop.f32.mrb[6].mxu0 }
 0x3d5   :  { %vm2075_vm10 = vcmp.gt.f32.partialorder %v2375_v39, 0.0  ;;  %v2077_v44 = vmul.f32 0.01, %v2375_v39  ;;  %v2073_v45 = vpop.f32.mrb[7].mxu0 }
 0x3d6   :  { %vm2076_vm11 = vcmp.gt.f32.partialorder %v2376_v41, 0.0  ;;  %v2078_v47 = vmul.f32 0.01, %v2376_v41 }
 0x3d7   :  { %v2079_v48 = vsel %vm2075_vm10, %v2375_v39, %v2077_v44 }
 0x3d8   :  { %v2080_v49 = vsel %vm2076_vm11, %v2376_v41, %v2078_v47  ;;  %v2093_v50 = vmul.f32 %v2086_v43, %v2079_v48 }
 0x3d9   :  { %v2094_v51 = vmul.f32 %v2090_v46, %v2080_v49 }
 0x3db   :  { %v2095_v52 = vadd.f32 %v2094_v51, %v2093_v50 }
 0x3dd   :  { %2096 = vadd.xlane.f32.xlu0 %v2095_v52 }
 0x46a   :  { %v2097_v54 = vpop.xlane.xlu0 %2096 }
 0x46b   :  { %v2105_v37 = vadd.f32 %v2370_v53, %v2097_v54 }
 0x46d   :  { %2107 = vst.msk [vmem:[%s3050_s11] sm:$0xff] %vm2106_vm12, %v2105_v37 }
 0x46e   :  { %2112 = vsyncpa [#allocation4], 1 }
 0x46f   :  { %2113 = vsyncpa [#allocation6], 1 }

</bundles_post_ra>
